<compile_context>
chip_gen: v7x
topology: tpu7x:2x2x1
jax: 0.10.0
libtpu: 0.0.40
codegen_flags: <defaults>
</compile_context>

<pallas_src>
import functools

import numpy as np
import jax
import jax.numpy as jnp
from jax.experimental import pallas as pl
from jax.experimental.pallas import tpu as pltpu


_TARGET_BLOCK_BYTES = 8 * 1024 * 1024   # real HBM bytes of input per grid step
_VMEM_BLOCK_CAP = 12 * 1024 * 1024      # lane-padded in+out bytes, one buffer
_VMEM_LIMIT_BYTES = 48 * 1024 * 1024    # < v7x's 64 MiB physical, with headroom


def _round_up(v, m):
    return ((v + m - 1) // m) * m


def _sublane_multiple(dtype) -> int:
    # Minimum second-minor tile for the dtype (item 8): 8 f32, 16 bf16, 32 i8.
    itemsize = jnp.dtype(dtype).itemsize
    return {4: 8, 2: 16, 1: 32}.get(itemsize, 8)


def _pick_row_block(rows_out, real_bytes_per_row, padded_bytes_per_row,
                    sublane) -> int:
    """Output rows per grid step (each output row consumes 2 input rows)."""
    r = _TARGET_BLOCK_BYTES // max(real_bytes_per_row, 1)         # item 2
    r = min(r, _VMEM_BLOCK_CAP // max(padded_bytes_per_row, 1))   # VMEM cap
    r = min(r, _round_up(rows_out, sublane))                      # no oversizing
    r = max(sublane, (r // sublane) * sublane)                    # item 8
    # Item 5: keep >= 2 grid steps when possible (v7x has 2 TensorCores).
    if pl.cdiv(rows_out, r) < 2 and rows_out > sublane:
        r = max(sublane, _round_up(pl.cdiv(rows_out, 2), sublane))
    return r


# ---------------------------------------------------------------------------
# Kernels
# ---------------------------------------------------------------------------
def _fused_pool_kernel(x_ref, o_ref):
    # x_ref: (2*R, W) raw rows of x; o_ref: (R, Wo) pooled rows.
    # Output row r only reads input rows 2r / 2r+1 and cols 2c / 2c+1, so the
    # ragged last grid block stays correct: stale OOB rows/lanes never reach a
    # valid output element (OOB output rows are masked on store).
    r, wo = o_ref.shape
    top = x_ref[pl.ds(0, r, stride=2), :]          # rows 0, 2, 4, ...
    bot = x_ref[pl.ds(1, r, stride=2), :]          # rows 1, 3, 5, ...
    h = jnp.maximum(top, bot)                      # (R, W)  H-pair reduce (VPU)
    # W-pair reduce on the lane axis (reviewer item 1); the lane-strided
    # slices run on relayout/XLU slots that are idle under the DMA.
    o_ref[...] = jnp.maximum(h[:, 0:2 * wo:2], h[:, 1:2 * wo:2])


def _hpair_max_kernel(z_ref, o_ref):
    # z_ref: (2*R, Wo) W-reduced rows; o_ref: (R, Wo).  (Proven v2 kernel.)
    r = o_ref.shape[0]
    top = z_ref[pl.ds(0, r, stride=2), :]
    bot = z_ref[pl.ds(1, r, stride=2), :]
    o_ref[...] = jnp.maximum(top, bot)


# ---------------------------------------------------------------------------
# Wrappers
# ---------------------------------------------------------------------------
@jax.jit
def _pool_fused(x):
    """pad=0, even H: single Pallas pass, HBM traffic = 1.25x input size."""
    N, C, H, W = x.shape
    Ho, Wo = H // 2, W // 2
    rows_out = N * C * Ho
    itemsize = jnp.dtype(x.dtype).itemsize
    r_blk = _pick_row_block(
        rows_out,
        real_bytes_per_row=2 * W * itemsize,
        padded_bytes_per_row=(2 * _round_up(W, 128)
                              + _round_up(Wo, 128)) * itemsize,
        sublane=_sublane_multiple(x.dtype))
    # H even => flat rows 2r, 2r+1 of (N*C*H, W) are exactly the two source
    # rows of flat output row r; pairs never straddle an (n, c) image or a
    # grid block (block row counts are even).  Reshape is metadata-only.
    xv = x.reshape(N * C * H, W)
    out = pl.pallas_call(
        _fused_pool_kernel,
        out_shape=jax.ShapeDtypeStruct((rows_out, Wo), x.dtype),
        grid=(pl.cdiv(rows_out, r_blk),),
        in_specs=[pl.BlockSpec((2 * r_blk, W), lambda i: (i, 0))],
        out_specs=pl.BlockSpec((r_blk, Wo), lambda i: (i, 0)),
        compiler_params=pltpu.CompilerParams(
            dimension_semantics=("parallel",),
            vmem_limit_bytes=_VMEM_LIMIT_BYTES),
        cost_estimate=pl.CostEstimate(
            flops=3 * rows_out * Wo, transcendentals=0,
            bytes_accessed=(N * C * H * W + rows_out * Wo) * itemsize),
    )(xv)
    return out.reshape(N, C, Ho, Wo)


@functools.partial(jax.jit, static_argnames=("pad",))
def _pool_twopass(x, pad):
    """Fallback: fused XLA pass for (pad +) W-pair max, Pallas for H-pair max."""
    N, C, H, W = x.shape
    Ho = (H + 2 * pad - 2) // 2 + 1
    Wo = (W + 2 * pad - 2) // 2 + 1
    Hp, Wp = 2 * Ho, 2 * Wo
    if pad:
        xp = jnp.pad(x, ((0, 0), (0, 0), (pad, pad), (pad, pad)),
                     mode="constant", constant_values=-jnp.inf)
    else:
        xp = x
    # Pad + crop + strided-slice max fuse into a single XLA loop fusion:
    # one read of x, one half-sized write (reviewer item 9).
    xp = xp[:, :, :Hp, :Wp]
    xw = jnp.maximum(xp[..., 0::2], xp[..., 1::2])        # (N, C, Hp, Wo)
    z = xw.reshape(N * C * Hp, Wo)                        # metadata-only view
    rows_out = N * C * Ho
    itemsize = jnp.dtype(x.dtype).itemsize
    r_blk = _pick_row_block(
        rows_out,
        real_bytes_per_row=2 * Wo * itemsize,
        padded_bytes_per_row=3 * _round_up(Wo, 128) * itemsize,
        sublane=_sublane_multiple(x.dtype))
    out2d = pl.pallas_call(
        _hpair_max_kernel,
        out_shape=jax.ShapeDtypeStruct((rows_out, Wo), x.dtype),
        grid=(pl.cdiv(rows_out, r_blk),),
        in_specs=[pl.BlockSpec((2 * r_blk, Wo), lambda i: (i, 0))],
        out_specs=pl.BlockSpec((r_blk, Wo), lambda i: (i, 0)),
        compiler_params=pltpu.CompilerParams(
            dimension_semantics=("parallel",),
            vmem_limit_bytes=_VMEM_LIMIT_BYTES),
        cost_estimate=pl.CostEstimate(
            flops=3 * rows_out * Wo, transcendentals=0,
            bytes_accessed=3 * rows_out * Wo * itemsize),
    )(z)
    return out2d.reshape(N, C, Ho, Wo)


def _reference_pool(x, pad):
    # Pure-JAX reference (matches torch.nn.MaxPool2d(2, 2, pad) for floats).
    return jax.lax.reduce_window(
        x, -jnp.inf, jax.lax.max,
        window_dimensions=(1, 1, 2, 2), window_strides=(1, 1, 2, 2),
        padding=((0, 0), (0, 0), (pad, pad), (pad, pad)))


@functools.cache
def _fused_path_supported() -> bool:
    """The fused kernel relies on Mosaic lowering lane-strided value slices
    (`h[:, 0::2]`), whose support varies across jaxlib/Mosaic releases.
    Probe once (compile + run + exact numerical check, narrow and multi-vreg
    widths) and fall back to the always-supported two-pass path otherwise."""
    try:
        key = jax.random.PRNGKey(1)
        for shape in ((1, 2, 16, 13), (1, 1, 16, 200)):
            probe = jax.random.normal(key, shape, dtype=jnp.float32)
            got = jax.block_until_ready(_pool_fused(probe))
            want = _reference_pool(probe, 0)
            if not bool(jnp.array_equal(got, want)):
                return False
        return True
    except Exception:  # LoweringException / NotImplementedError / XLA errors
        return False


def pool_forward(x, pad: int = 0):
    """Pallas equivalent of Pool(pad).forward(x) for NCHW inputs."""
    if pad not in (0, 1):
        raise ValueError("nn.MaxPool2d(kernel_size=2) allows padding in {0, 1}")
    if x.ndim != 4:
        raise ValueError("expected NCHW input")
    _, _, H, W = x.shape
    if pad == 1 and not jnp.issubdtype(x.dtype, jnp.floating):
        raise TypeError("pad=1 uses -inf padding; requires a float dtype")
    if pad == 0 and H >= 2 and W >= 2 and H % 2 == 0 and _fused_path_supported():
        return _pool_fused(x)
    return _pool_twopass(x, pad=pad)


if __name__ == "__main__":
    key = jax.random.PRNGKey(0)
    k0, k1 = jax.random.split(key)

    # Small NCHW feature map matching the module's typical use (fused path).
    x_small = jax.random.normal(k0, (2, 4, 16, 16), dtype=jnp.float32)
    # Odd spatial dims: exercises cropping, ragged blocks and the fallback.
    x_odd = jax.random.normal(k1, (2, 3, 21, 29), dtype=jnp.float32)

    for x in (x_small, x_odd):
        for pad in (0, 1):
            out = jax.block_until_ready(pool_forward(x, pad=pad))
            ref = jax.block_until_ready(_reference_pool(x, pad))
            assert out.shape == ref.shape, (out.shape, ref.shape)
            np.testing.assert_array_equal(np.asarray(out), np.asarray(ref))

    print("KERNEL_OK")
</pallas_src>

<mosaic_0001>
module attributes {stable_mosaic.version = 11 : i64} {
  func.func @_hpair_max_kernel(%arg0: i32, %arg1: memref<64x8xf32, #tpu.memory_space<vmem>>, %arg2: memref<32x8xf32, #tpu.memory_space<vmem>>) attributes {dimension_semantics = [#tpu.dimension_semantics<parallel>], iteration_bounds = array<i64: 2>, scalar_prefetch = 0 : i64, scratch_operands = 0 : i64, tpu.core_type = #tpu.core_type<tc>, window_params = [{transform_indices = @transform_0, window_bounds = array<i64: 64, 8>}, {transform_indices = @transform_1, window_bounds = array<i64: 32, 8>}]} {
    %c0 = arith.constant 0 : index
    %c0_0 = arith.constant 0 : index
    %0 = tpu.strided_load %arg1[%c0, %c0_0] {strides = array<i32: 2, 1>} : memref<64x8xf32, #tpu.memory_space<vmem>>, vector<32x8xf32>
    %c1 = arith.constant 1 : index
    %c0_1 = arith.constant 0 : index
    %1 = tpu.strided_load %arg1[%c1, %c0_1] {strides = array<i32: 2, 1>} : memref<64x8xf32, #tpu.memory_space<vmem>>, vector<32x8xf32>
    %2 = arith.maximumf %0, %1 : vector<32x8xf32>
    %c0_2 = arith.constant 0 : index
    %c0_3 = arith.constant 0 : index
    %3 = vector.load %arg2[%c0_2, %c0_3] : memref<32x8xf32, #tpu.memory_space<vmem>>, vector<32x8xf32>
    tpu.vector_store %arg2[%c0_2, %c0_3], %2 {strides = array<i32>} : memref<32x8xf32, #tpu.memory_space<vmem>>, vector<32x8xf32>,
    return
  }
  func.func @transform_0(%arg0: i32) -> (i32, i32) {
    %c0_i32 = arith.constant 0 : i32
    %c0_i32_0 = arith.constant 0 : i32
    return %arg0, %c0_i32 : i32, i32
  }
  func.func @transform_1(%arg0: i32) -> (i32, i32) {
    %c0_i32 = arith.constant 0 : i32
    %c0_i32_0 = arith.constant 0 : i32
    return %arg0, %c0_i32 : i32, i32
  }
}

</mosaic_0001>

<bundles_post_ra>
// kernel: _pool_twopass.1
= control target key start
LH: loop header
LB: loop body
LE: loop exit
PB: predicated region body
PF: predicated region fallthrough
CT: control target
= control target key end

     0   :  { %6 = vsyncpa [#allocation3], 0  ;;  %s462_s0 = inlined_call_operand.vmem [shape: f32[128,8], index: 0, kind: input, shape index: {}]   ;;  %s463_s1 = inlined_call_operand.hbm [shape: f32[64,8], index: 1, kind: output, shape index: {}]  }
   0x1   :  { %8 = vsyncpa [#allocation3 + $0x1], 0  ;;  %s356_s6 = smov 0   ;;  %s358_s7 = smov 0  }
   0x2   :  { %s360_s8 = smov 0   ;;  %s362_s9 = smov 0  }
   0x3 LB: > { %s377_s10 = sadd.s32 4294967295, %s341_s9   ;;  %s218_s11 = sadd.s32 4294967294, %s341_s9   ;;  %s341_s9 = sphi %s362_s9, %s469_s9   ;;  %s337_s8 = sphi %s360_s8, %s468_s8   ;;  %s333_s7 = sphi %s358_s7, %s467_s7   ;;  %s329_s6 = sphi %s356_s6, %s466_s6  }
   0x4   : > { %s381_s12 = sadd.s32 1, %s341_s9   ;;  %s47_s13 = sadd.s32 1, %s337_s8 }
   0x5   : > { %s44_s14 = ssub.s32 %s341_s9, %s381_s12  ;;  %p57_p0 = scmp.ne.s32.totalorder %s337_s8, %s333_s7 }
   0x6   : > { %p45_p1 = scmp.eq.s32.totalorder %s44_s14, 0  ;;  %p58_p2 = scmp.eq.s32.totalorder %s377_s10, 1 }
   0x7   : > { %p63_p3 = scmp.ne.s32.totalorder %s333_s7, %s329_s6  ;;  %p64_p4 = scmp.eq.s32.totalorder %s218_s11, 1 }
   0x8   : > { %s392_s15 = scalar_select %p45_p1, %s337_s8, %s47_s13  }
   0x9   : > { %p394_p5 = por %p58_p2, %p57_p0  ;;  %p398_p6 = por %p64_p4, %p63_p3 }
   0xa   : > { %p221_p7 = scmp.ge.s32.totalorder %s341_s9, 1  ;;  %p91_p8 = scmp.lt.s32.totalorder %s341_s9, 3 }
   0xc   : > { %p92_p9 = pnand %p221_p7, %p91_p8 }
   0xd   : > { %s108_s18 = sand.u32 (!%p92_p9), 1, %s333_s7   ;;  %s223_s19 = sshll.u32 (!%p92_p9), %s377_s10, 3  ;;  %vm137_vm0 = vcmask (!%p92_p9), 64512  }
   0xe   : > { %95 = sbr.rel (%p92_p9) target bundleno = 44 (0x2c), region = 24  ;;  %s222_s20 = sshll.u32 (!%p92_p9), %s108_s18, 5 }
   0xf   : > { %p112_p10 = scmp.lt.s32.totalorder (!%p92_p9), %s223_s19, 15  ;;  %s110_s22 = scalar_lea.vmem (!%p92_p9), [#allocation2], %s222_s20 }
  0x10   : > { %s156_s23 = sshll.u32 (!%p92_p9), %s110_s22, 4  ;;  %s237_s27 = sshll.u32 (!%p92_p9), %s377_s10, 9  ;;  %s410_s23 = int_to_ptr.vmem [resolvable:$true] %s156_s23 }
  0x11   : > { %s415_s30 = scalar_lea.hbm (!%p92_p9), %s463_s1, %s237_s27  ;;  %s421_s2 = scalar_lea.sflag (!%p92_p9), [#allocation3], %s108_s18 }
  0x12   : > { %s279_s3 = scalar_lea.vmem (!%p92_p9), %s410_s23, 512  ;;  %s343_s4 = smov (!%p92_p9), [#allocation2]  }
  0x13   : > { %p280_p11 = scmp.ne.s32.totalorder (!%p92_p9), %s410_s23, %s279_s3  ;;  %s283_s5 = sshll.u32 (!%p92_p9), %s343_s4, 4  ;;  %s284_s5 = int_to_ptr.vmem [resolvable:$false] %s283_s5 }
  0x14   : > { %s285_s10 = scalar_lea.vmem (!%p92_p9), %s284_s5, 1024  ;;  %p286_p0 = scmp.lt.s32.totalorder (!%p92_p9), %s410_s23, %s284_s5 }
  0x15   : > { %s471_s19 = smov (!%p112_p10, %s223_s19), 15  ;;  %p281_p12 = pnand %p280_p11, %p394_p5 }
  0x16   : > { %s224_s21 = sshll.u32 %s471_s19, 3  ;;  %p287_p1 = scmp.lt.s32.totalorder %s285_s10, %s279_s3 }
  0x17   : > { %s115_s26 = scalar_lea.vmem %s462_s0, %s224_s21  ;;  %p282_p13 = pneg %p281_p12 }
  0x18   : > { %v118_v0 = vld [vmem:[%s115_s26] ss:$2 sm:$0xff]  ;;  %v228_v1 = vld [vmem:[%s115_s26 + $0x1] ss:$2 sm:$0xff]  ;;  %v225_v2 = vld [vmem:[%s115_s26 + $0x10] ss:$2 sm:$0xff]  ;;  %p288_p2 = por %p287_p1, %p286_p0 }
  0x19   : > { %v133_v3 = vmax.f32 %v118_v0, %v228_v1  ;;  %v229_v4 = vld [vmem:[%s115_s26 + $0x11] ss:$2 sm:$0xff]  ;;  %v226_v5 = vld [vmem:[%s115_s26 + $0x20] ss:$2 sm:$0xff]  ;;  %v230_v6 = vld [vmem:[%s115_s26 + $0x21] ss:$2 sm:$0xff] }
  0x1a   : > { %v134_v7 = vmax.f32 %v225_v2, %v229_v4  ;;  %v135_v8 = vmax.f32 %v226_v5, %v230_v6  ;;  %v227_v9 = vld [vmem:[%s115_s26 + $0x30] ss:$2 sm:$0xff]  ;;  %v231_v10 = vld [vmem:[%s115_s26 + $0x31] ss:$2 sm:$0xff]  ;;  %p289_p3 = pnand %p288_p2, %p282_p13 }
  0x1b   : > { %138 = vst.msk [vmem:[%s110_s22] sm:$0xff] %vm137_vm0, %v133_v3  ;;  %v136_v11 = vmax.f32 %v227_v9, %v231_v10 }
  0x1c   : > { %139 = vst.msk [vmem:[%s110_s22 + $0x8] sm:$0xff] %vm137_vm0, %v134_v7  ;;  %140 = vst.msk [vmem:[%s110_s22 + $0x10] sm:$0xff] %vm137_vm0, %v135_v8 }
  0x1d   : > { %141 = vst.msk [vmem:[%s110_s22 + $0x18] sm:$0xff] %vm137_vm0, %v136_v11 }
  0x1e   : > { %292 = shalt.err (!%p289_p3)
}
  0x1f   : > { %s293_s11 = scalar_lea.hbm %s415_s30, 512  ;;  %s297_s18 = scalar_lea.hbm %s463_s1, 1024 }
  0x20   : > { %p294_p4 = scmp.ne.s32.totalorder %s415_s30, %s293_s11  ;;  %p298_p9 = scmp.lt.u32.totalorder %s415_s30, %s463_s1 }
  0x21   : > { %p299_p10 = scmp.lt.u32.totalorder %s297_s18, %s293_s11  ;;  %p301_p12 = scmp.lt.u32.totalorder %s293_s11, %s415_s30 }
  0x22   : > { %p295_p7 = pnand %p294_p4, %p394_p5 }
  0x23   : > { %p300_p11 = por %p299_p10, %p298_p9 }
  0x24   : > { %p296_p8 = pneg %p295_p7 }
  0x25   : > { %p302_p13 = por %p301_p12, %p300_p11 }
  0x27   : > { %p303_p0 = pnand %p302_p13, %p296_p8 }
  0x29   : > { %306 = shalt.err (!%p303_p0)
}
  0x2a   : > { %s344_s21 = smov 128   ;;  %s345_s22 = smov 8  }
  0x2b   : > { %238 = dma.vmem_to_hbm [thread:$0]  (%p394_p5), %s410_s23, 512, %s415_s30, %s421_s2, %s344_s21, %s344_s21, %s345_s22  }
  0x2c PF: > { %p244_p1 = scmp.ge.s32.totalorder %s341_s9, 2  ;;  %s171_s24 = sand.u32 1, %s329_s6  }
  0x2d   : > { %s172_s25 = scalar_lea.sflag [#allocation3], %s171_s24 }
  0x2e   : > { %p241_p2 = pnand %p244_p1, %p398_p6 }
  0x30   : > { %324 = dma.done.wait (!%p241_p2), %s172_s25, 512  }
  0x31   : > { %326 = vsyncadd (!%p241_p2), %s172_s25, 4294966784  ;;  %p11_p3 = scmp.ge.s32.totalorder %s381_s12, 4   ;;  %s466_s6 = smov %s333_s7 }
  0x32   : > { %s467_s7 = smov %s337_s8  ;;  %s468_s8 = smov %s392_s15 }
  0x33   : > { %s469_s9 = smov %s381_s12  ;;  %13 = sbr.rel (!%p11_p3) target bundleno = 3 (0x3), region = 66 }
  0x3a   :  { %177 = vsyncpa [#allocation3], 1 }
  0x3b   :  { %179 = vsyncpa [#allocation3 + $0x1], 1 }

</bundles_post_ra>
